<compile_context>
chip_gen: v7x
topology: tpu7x:2x2x1
jax: 0.10.0
libtpu: 0.0.40
codegen_flags: <defaults>
</compile_context>

<pallas_src>
import jax
import jax.numpy as jnp
from jax import lax
from jax.experimental import pallas as pl
from jax.experimental.pallas import tpu as pltpu

EPS = 1e-5  # torch InstanceNorm2d default eps


# ---------------------------------------------------------------------------
# Fused kernel — one grid step per context batch element.
#   x_ref   : (1, 3, S)   context slab, NCHW with spatial flattened (S = H*W)
#   w_ref   : (C, 3)      1x1 conv weight
#   p_ref   : (C, 4)      packed per-channel params [conv_bias, in_w, in_b, alpha]
#   wgb_ref : (C, 2F)     [Wg^T | Wb^T]
#   bgb_ref : (1, 2F)     [bg | bb]
#   inp_ref : (R, F)      this batch's slice of input.reshape(-1, F), R = C*S/C = S
#   o_ref   : (R, F)
# ---------------------------------------------------------------------------
def _fused_film_kernel(x_ref, w_ref, p_ref, wgb_ref, bgb_ref, inp_ref, o_ref):
    x = x_ref[0].astype(jnp.float32)               # (3, S)
    w = w_ref[...]                                 # (C, 3)
    bias  = p_ref[:, 0:1]                          # (C, 1)
    g     = p_ref[:, 1:2]
    b_in  = p_ref[:, 2:3]
    alpha = p_ref[:, 3:4]

    # 1x1 conv: K=3 contraction as 3 VPU outer-product FMAs.
    y = (w[:, 0:1] * x[0:1, :]
         + w[:, 1:2] * x[1:2, :]
         + w[:, 2:3] * x[2:3, :]
         + bias)                                   # (C, S)

    # InstanceNorm2d: one-pass per-(batch,channel) stats over spatial, biased
    # variance, affine folded into a single scale/shift.
    mean = jnp.mean(y, axis=1, keepdims=True)                      # (C, 1)
    var = jnp.mean(y * y, axis=1, keepdims=True) - mean * mean
    scale = g * lax.rsqrt(var + EPS)
    shift = b_in - mean * scale
    yn = y * scale + shift

    # PReLU(C): per-channel alpha.
    head = jnp.where(yn >= 0, yn, alpha * yn)      # (C, S)

    # torch: context.contiguous().view(-1, C). For the per-batch slab this is a
    # row-major regrouping into rows of C; identity when S == C (test config).
    C = head.shape[0]
    ctx_rows = head.reshape(-1, C)                 # (R, C)

    # One wide lane-dense matmul: [gamma | beta] = ctx_rows @ [Wg^T | Wb^T] + b.
    gb = jnp.dot(ctx_rows, wgb_ref[...],
                 preferred_element_type=jnp.float32) + bgb_ref[...]   # (R, 2F)
    F = o_ref.shape[-1]
    gamma = gb[:, :F]
    beta = gb[:, F:]

    inp = inp_ref[...].astype(jnp.float32)
    o_ref[...] = (inp * gamma + beta).astype(o_ref.dtype)


# ---------------------------------------------------------------------------
# Parameters (deterministic, synthetic — shapes match the torch module) and a
# one-time layout-prep step hoisted out of the jitted forward.
# ---------------------------------------------------------------------------
def init_params(key, input_size, feature_size):
    assert input_size == 64, "context.view(-1, 64) forces input_size == 64"
    ks = jax.random.split(key, 8)

    def nrm(k, shape, scale=0.05):
        return scale * jax.random.normal(k, shape, jnp.float32)

    return dict(
        c1_w=nrm(ks[0], (64, 3, 1, 1)),                 # Conv2d(3, 64, 1x1).weight
        c1_b=nrm(ks[1], (64,)),                         # .bias
        in_w=1.0 + nrm(ks[2], (64,), 0.1),              # InstanceNorm2d(64).weight
        in_b=nrm(ks[3], (64,), 0.1),                    # InstanceNorm2d(64).bias
        pr_a=jnp.full((64,), 0.25, jnp.float32),        # PReLU(64) default alpha
        g_w=nrm(ks[4], (feature_size, input_size)),     # gamma Linear weight
        g_b=nrm(ks[5], (feature_size,)),
        b_w=nrm(ks[6], (feature_size, input_size)),     # beta Linear weight
        b_b=nrm(ks[7], (feature_size,)),
    )


def prepare_params(raw):
    """Hoisted (one-time) weight layout transforms."""
    return dict(
        c1_w2d=raw['c1_w'].reshape(64, 3).astype(jnp.float32),
        c1_pack=jnp.stack(
            [raw['c1_b'], raw['in_w'], raw['in_b'], raw['pr_a']],
            axis=1).astype(jnp.float32),                               # (64, 4)
        w_gb=jnp.concatenate([raw['g_w'].T, raw['b_w'].T],
                             axis=1).astype(jnp.float32),              # (64, 2F)
        b_gb=jnp.concatenate([raw['g_b'], raw['b_b']]
                             ).reshape(1, -1).astype(jnp.float32),     # (1, 2F)
    )


# ---------------------------------------------------------------------------
# Forward — wrapper glue is only free row-major reshapes (they reproduce
# torch's .contiguous().view(...) exactly); all compute is in ONE kernel.
# ---------------------------------------------------------------------------
def film11_forward(inp, context, params):
    B, Cc, Hc, Wc = context.shape
    S = Hc * Wc
    ctx_flat = context.reshape(B, Cc, S)

    C = params['c1_w2d'].shape[0]                 # 64
    F2 = params['w_gb'].shape[1]
    F = F2 // 2

    rows_per_batch = (C * S) // C                 # == S rows of 64 per batch slab
    N = B * rows_per_batch
    assert N * F == inp.size, "gamma.view(input.shape) requires N*F == input.numel()"
    if B > 1:
        assert rows_per_batch % 8 == 0, "rows per batch must be sublane-aligned"
    inp_rows = inp.reshape(N, F)

    out_rows = pl.pallas_call(
        _fused_film_kernel,
        out_shape=jax.ShapeDtypeStruct((N, F), inp.dtype),
        grid=(B,),
        in_specs=[
            pl.BlockSpec((1, Cc, S), lambda b: (b, 0, 0)),
            pl.BlockSpec((C, Cc), lambda b: (0, 0)),
            pl.BlockSpec((C, 4), lambda b: (0, 0)),
            pl.BlockSpec((C, F2), lambda b: (0, 0)),
            pl.BlockSpec((1, F2), lambda b: (0, 0)),
            pl.BlockSpec((rows_per_batch, F), lambda b: (b, 0)),
        ],
        out_specs=pl.BlockSpec((rows_per_batch, F), lambda b: (b, 0)),
        compiler_params=pltpu.CompilerParams(
            dimension_semantics=("parallel",)),
    )(ctx_flat, params['c1_w2d'], params['c1_pack'],
      params['w_gb'], params['b_gb'], inp_rows)

    return out_rows.reshape(inp.shape)


if __name__ == "__main__":
    # Shapes implied by the module: input_size must equal 64 (the conv_1 output
    # channel count), and N * feature_size must equal input.numel().
    input_size, feature_size = 64, 128
    B = 2
    Hc = Wc = 8                      # context spatial -> N = B*Hc*Wc = 128 rows
    Ci, Hi, Wi = 32, 16, 16          # input (2,32,16,16): 2*32*16*16 = 128*128

    key = jax.random.PRNGKey(0)
    kx, kc, kp = jax.random.split(key, 3)
    x = jax.random.normal(kx, (B, Ci, Hi, Wi), jnp.float32)
    context = jax.random.normal(kc, (B, 3, Hc, Wc), jnp.float32)
    params = prepare_params(init_params(kp, input_size, feature_size))

    out = jax.jit(film11_forward)(x, context, params)
    out = jax.block_until_ready(out)
    assert out.shape == x.shape, out.shape
    assert jnp.all(jnp.isfinite(out))
    print("KERNEL_OK")
</pallas_src>

<mosaic_0001>
module attributes {stable_mosaic.version = 11 : i64} {
  func.func @_fused_film_kernel(%arg0: i32, %arg1: memref<1x3x64xf32, #tpu.memory_space<vmem>>, %arg2: memref<64x3xf32, #tpu.memory_space<vmem>>, %arg3: memref<64x4xf32, #tpu.memory_space<vmem>>, %arg4: memref<64x256xf32, #tpu.memory_space<vmem>>, %arg5: memref<1x256xf32, #tpu.memory_space<vmem>>, %arg6: memref<64x128xf32, #tpu.memory_space<vmem>>, %arg7: memref<64x128xf32, #tpu.memory_space<vmem>>) attributes {dimension_semantics = [#tpu.dimension_semantics<parallel>], iteration_bounds = array<i64: 2>, scalar_prefetch = 0 : i64, scratch_operands = 0 : i64, tpu.core_type = #tpu.core_type<tc>, window_params = [{transform_indices = @transform_0, window_bounds = array<i64: 1, 3, 64>}, {pipeline_mode = #tpu.pipeline_mode<synchronous>, transform_indices = @transform_1, window_bounds = array<i64: 64, 3>}, {pipeline_mode = #tpu.pipeline_mode<synchronous>, transform_indices = @transform_2, window_bounds = array<i64: 64, 4>}, {pipeline_mode = #tpu.pipeline_mode<synchronous>, transform_indices = @transform_3, window_bounds = array<i64: 64, 256>}, {pipeline_mode = #tpu.pipeline_mode<synchronous>, transform_indices = @transform_4, window_bounds = array<i64: 1, 256>}, {transform_indices = @transform_5, window_bounds = array<i64: 64, 128>}, {transform_indices = @transform_6, window_bounds = array<i64: 64, 128>}]} {
    %c0 = arith.constant 0 : index
    %c0_0 = arith.constant 0 : index
    %c0_1 = arith.constant 0 : index
    %0 = vector.load %arg1[%c0, %c0_0, %c0_1] : memref<1x3x64xf32, #tpu.memory_space<vmem>>, vector<1x3x64xf32>
    %1 = vector.shape_cast %0 : vector<1x3x64xf32> to vector<3x64xf32>
    %c0_2 = arith.constant 0 : index
    %c0_3 = arith.constant 0 : index
    %2 = vector.load %arg2[%c0_2, %c0_3] : memref<64x3xf32, #tpu.memory_space<vmem>>, vector<64x3xf32>
    %c0_4 = arith.constant 0 : index
    %c0_5 = arith.constant 0 : index
    %3 = vector.load %arg3[%c0_4, %c0_5] : memref<64x4xf32, #tpu.memory_space<vmem>>, vector<64x1xf32>
    %c0_6 = arith.constant 0 : index
    %c1 = arith.constant 1 : index
    %4 = vector.load %arg3[%c0_6, %c1] : memref<64x4xf32, #tpu.memory_space<vmem>>, vector<64x1xf32>
    %c0_7 = arith.constant 0 : index
    %c2 = arith.constant 2 : index
    %5 = vector.load %arg3[%c0_7, %c2] : memref<64x4xf32, #tpu.memory_space<vmem>>, vector<64x1xf32>
    %c0_8 = arith.constant 0 : index
    %c3 = arith.constant 3 : index
    %6 = vector.load %arg3[%c0_8, %c3] : memref<64x4xf32, #tpu.memory_space<vmem>>, vector<64x1xf32>
    %7 = vector.extract_strided_slice %2 {offsets = [0, 0], sizes = [64, 1], strides = [1, 1]} : vector<64x3xf32> to vector<64x1xf32>
    %8 = vector.extract_strided_slice %1 {offsets = [0, 0], sizes = [1, 64], strides = [1, 1]} : vector<3x64xf32> to vector<1x64xf32>
    %9 = vector.broadcast %7 : vector<64x1xf32> to vector<64x64xf32>
    %10 = vector.broadcast %8 : vector<1x64xf32> to vector<64x64xf32>
    %11 = arith.mulf %9, %10 : vector<64x64xf32>
    %12 = vector.extract_strided_slice %2 {offsets = [0, 1], sizes = [64, 1], strides = [1, 1]} : vector<64x3xf32> to vector<64x1xf32>
    %13 = vector.extract_strided_slice %1 {offsets = [1, 0], sizes = [1, 64], strides = [1, 1]} : vector<3x64xf32> to vector<1x64xf32>
    %14 = vector.broadcast %12 : vector<64x1xf32> to vector<64x64xf32>
    %15 = vector.broadcast %13 : vector<1x64xf32> to vector<64x64xf32>
    %16 = arith.mulf %14, %15 : vector<64x64xf32>
    %17 = arith.addf %11, %16 : vector<64x64xf32>
    %18 = vector.extract_strided_slice %2 {offsets = [0, 2], sizes = [64, 1], strides = [1, 1]} : vector<64x3xf32> to vector<64x1xf32>
    %19 = vector.extract_strided_slice %1 {offsets = [2, 0], sizes = [1, 64], strides = [1, 1]} : vector<3x64xf32> to vector<1x64xf32>
    %20 = vector.broadcast %18 : vector<64x1xf32> to vector<64x64xf32>
    %21 = vector.broadcast %19 : vector<1x64xf32> to vector<64x64xf32>
    %22 = arith.mulf %20, %21 : vector<64x64xf32>
    %23 = arith.addf %17, %22 : vector<64x64xf32>
    %24 = vector.broadcast %3 : vector<64x1xf32> to vector<64x64xf32>
    %25 = arith.addf %23, %24 : vector<64x64xf32>
    %cst = arith.constant dense<0.000000e+00> : vector<64xf32>
    %26 = vector.multi_reduction <add>, %25, %cst [1] : vector<64x64xf32> to vector<64xf32>
    %27 = vector.shape_cast %26 : vector<64xf32> to vector<64x1xf32>
    %cst_9 = arith.constant 6.400000e+01 : f32
    %28 = vector.broadcast %cst_9 : f32 to vector<64x1xf32>
    %29 = arith.divf %27, %28 : vector<64x1xf32>
    %30 = arith.mulf %25, %25 : vector<64x64xf32>
    %cst_10 = arith.constant dense<0.000000e+00> : vector<64xf32>
    %31 = vector.multi_reduction <add>, %30, %cst_10 [1] : vector<64x64xf32> to vector<64xf32>
    %32 = vector.shape_cast %31 : vector<64xf32> to vector<64x1xf32>
    %cst_11 = arith.constant 6.400000e+01 : f32
    %33 = vector.broadcast %cst_11 : f32 to vector<64x1xf32>
    %34 = arith.divf %32, %33 : vector<64x1xf32>
    %35 = arith.mulf %29, %29 : vector<64x1xf32>
    %36 = arith.subf %34, %35 : vector<64x1xf32>
    %cst_12 = arith.constant 9.99999974E-6 : f32
    %37 = vector.broadcast %cst_12 : f32 to vector<64x1xf32>
    %38 = arith.addf %36, %37 : vector<64x1xf32>
    %39 = math.rsqrt %38 : vector<64x1xf32>
    %40 = arith.mulf %4, %39 : vector<64x1xf32>
    %41 = arith.mulf %29, %40 : vector<64x1xf32>
    %42 = arith.subf %5, %41 : vector<64x1xf32>
    %43 = vector.broadcast %40 : vector<64x1xf32> to vector<64x64xf32>
    %44 = arith.mulf %25, %43 : vector<64x64xf32>
    %45 = vector.broadcast %42 : vector<64x1xf32> to vector<64x64xf32>
    %46 = arith.addf %44, %45 : vector<64x64xf32>
    %cst_13 = arith.constant 0.000000e+00 : f32
    %47 = vector.broadcast %cst_13 : f32 to vector<64x64xf32>
    %48 = arith.cmpf oge, %46, %47 : vector<64x64xf32>
    %49 = vector.broadcast %6 : vector<64x1xf32> to vector<64x64xf32>
    %50 = arith.mulf %49, %46 : vector<64x64xf32>
    %51 = arith.select %48, %46, %50 : vector<64x64xi1>, vector<64x64xf32>
    %c0_14 = arith.constant 0 : index
    %c0_15 = arith.constant 0 : index
    %52 = vector.load %arg4[%c0_14, %c0_15] : memref<64x256xf32, #tpu.memory_space<vmem>>, vector<64x256xf32>
    %cst_16 = arith.constant dense<0.000000e+00> : vector<64x256xf32>
    %53 = tpu.matmul %51, %52, %cst_16 {dimension_numbers = #tpu.dot_dimension_numbers<[1], [0], [0], [1], [0, 0, 1, 1], [], []>} : vector<64x64xf32>, vector<64x256xf32>, vector<64x256xf32> -> vector<64x256xf32>
    %c0_17 = arith.constant 0 : index
    %c0_18 = arith.constant 0 : index
    %54 = vector.load %arg5[%c0_17, %c0_18] : memref<1x256xf32, #tpu.memory_space<vmem>>, vector<1x256xf32>
    %55 = vector.broadcast %54 : vector<1x256xf32> to vector<64x256xf32>
    %56 = arith.addf %53, %55 : vector<64x256xf32>
    %57 = vector.extract_strided_slice %56 {offsets = [0, 0], sizes = [64, 128], strides = [1, 1]} : vector<64x256xf32> to vector<64x128xf32>
    %58 = vector.extract_strided_slice %56 {offsets = [0, 128], sizes = [64, 128], strides = [1, 1]} : vector<64x256xf32> to vector<64x128xf32>
    %c0_19 = arith.constant 0 : index
    %c0_20 = arith.constant 0 : index
    %59 = vector.load %arg6[%c0_19, %c0_20] : memref<64x128xf32, #tpu.memory_space<vmem>>, vector<64x128xf32>
    %60 = arith.mulf %59, %57 : vector<64x128xf32>
    %61 = arith.addf %60, %58 : vector<64x128xf32>
    %c0_21 = arith.constant 0 : index
    %c0_22 = arith.constant 0 : index
    %62 = vector.load %arg7[%c0_21, %c0_22] : memref<64x128xf32, #tpu.memory_space<vmem>>, vector<64x128xf32>
    tpu.vector_store %arg7[%c0_21, %c0_22], %61 {strides = array<i32>} : memref<64x128xf32, #tpu.memory_space<vmem>>, vector<64x128xf32>,
    return
  }
  func.func @transform_0(%arg0: i32) -> (i32, i32, i32) {
    %c0_i32 = arith.constant 0 : i32
    %c0_i32_0 = arith.constant 0 : i32
    %c0_i32_1 = arith.constant 0 : i32
    return %arg0, %c0_i32, %c0_i32_0 : i32, i32, i32
  }
  func.func @transform_1(%arg0: i32) -> (i32, i32) {
    %c0_i32 = arith.constant 0 : i32
    %c0_i32_0 = arith.constant 0 : i32
    %c0_i32_1 = arith.constant 0 : i32
    return %c0_i32, %c0_i32_0 : i32, i32
  }
  func.func @transform_2(%arg0: i32) -> (i32, i32) {
    %c0_i32 = arith.constant 0 : i32
    %c0_i32_0 = arith.constant 0 : i32
    %c0_i32_1 = arith.constant 0 : i32
    return %c0_i32, %c0_i32_0 : i32, i32
  }
  func.func @transform_3(%arg0: i32) -> (i32, i32) {
    %c0_i32 = arith.constant 0 : i32
    %c0_i32_0 = arith.constant 0 : i32
    %c0_i32_1 = arith.constant 0 : i32
    return %c0_i32, %c0_i32_0 : i32, i32
  }
  func.func @transform_4(%arg0: i32) -> (i32, i32) {
    %c0_i32 = arith.constant 0 : i32
    %c0_i32_0 = arith.constant 0 : i32
    %c0_i32_1 = arith.constant 0 : i32
    return %c0_i32, %c0_i32_0 : i32, i32
  }
  func.func @transform_5(%arg0: i32) -> (i32, i32) {
    %c0_i32 = arith.constant 0 : i32
    %c0_i32_0 = arith.constant 0 : i32
    return %arg0, %c0_i32 : i32, i32
  }
  func.func @transform_6(%arg0: i32) -> (i32, i32) {
    %c0_i32 = arith.constant 0 : i32
    %c0_i32_0 = arith.constant 0 : i32
    return %arg0, %c0_i32 : i32, i32
  }
}

</mosaic_0001>

<bundles_post_ra>
// kernel: film11_forward.1
= control target key start
LH: loop header
LB: loop body
LE: loop exit
PB: predicated region body
PF: predicated region fallthrough
CT: control target
= control target key end

     0   :  { %s1222_s21 = smov 0   ;;  %s1585_s0 = inlined_call_operand.vmem [shape: f32[2,3,64], index: 0, kind: input, shape index: {}]   ;;  %s1586_s1 = inlined_call_operand.vmem [shape: f32[64,3], index: 1, kind: input, shape index: {}]   ;;  %s1587_s2 = inlined_call_operand.vmem [shape: f32[64,4], index: 2, kind: input, shape index: {}]   ;;  %s1588_s3 = inlined_call_operand.vmem [shape: f32[64,256], index: 3, kind: input, shape index: {}]   ;;  %s1589_s4 = inlined_call_operand.vmem [shape: f32[1,256], index: 4, kind: input, shape index: {}]   ;;  %s1590_s5 = inlined_call_operand.vmem [shape: f32[128,128], index: 5, kind: input, shape index: {}]   ;;  %s1591_s6 = inlined_call_operand.vmem [shape: f32[128,128], index: 6, kind: output, shape index: {}]  }
   0x1 LB: > { %s1228_s22 = sadd.s32 4294967295, %s1179_s21   ;;  %p1076_p0 = scmp.ge.s32.totalorder %s1179_s21, 1  ;;  %s1179_s21 = sphi %s1222_s21, %s16_s21  }
   0x2   : > { %p222_p1 = scmp.lt.s32.totalorder %s1179_s21, 3 }
   0x4   : > { %p223_p2 = pnand %p1076_p0, %p222_p1 }
   0x5   : > { %v273_v0 = vld [vmem:[%s1586_s1] sm:$0xff] (!%p223_p2)  ;;  %v1181_v1 = vmov (!%p223_p2), 2   ;;  %v1182_v2 = vmov (!%p223_p2), 1   ;;  %v274_v3 = vld [vmem:[%s1586_s1 + $0x8] sm:$0xff] (!%p223_p2)  ;;  %v279_v5 = vld [vmem:[%s1586_s1 + $0x30] sm:$0xff] (!%p223_p2)  ;;  %v1183_v7 = vmov (!%p223_p2), 0   ;;  %v329_v25 = vlaneseq (!%p223_p2) }
   0x6   : > { %226 = sbr.rel (%p223_p2) target bundleno = 884 (0x374), region = 44  ;;  %1131 = vset.pattern.permute.xlu0 (!%p223_p2), %v1181_v1  ;;  %1130 = vset.pattern.permute.xlu1 (!%p223_p2), %v1182_v2  ;;  %v277_v4 = vld [vmem:[%s1586_s1 + $0x20] sm:$0xff] (!%p223_p2)  ;;  %v275_v6 = vld [vmem:[%s1586_s1 + $0x10] sm:$0xff] (!%p223_p2)  ;;  %v280_v8 = vld [vmem:[%s1586_s1 + $0x38] sm:$0xff] (!%p223_p2)  ;;  %p256_p3 = scmp.lt.s32.totalorder (!%p223_p2), %s1228_s22, 1  ;;  %vm493_vm0 = vcmask (!%p223_p2), 523264  }
   0x7   : > { %394 = vperm.xlu0 (!%p223_p2), %1131, %v273_v0   ;;  %342 = vperm.xlu1 (!%p223_p2), %1130, %v273_v0   ;;  %v278_v9 = vld [vmem:[%s1586_s1 + $0x28] sm:$0xff] (!%p223_p2)  ;;  %v1262_v10 = vld [vmem:[%s1587_s2] sm:$0xff] (!%p223_p2)  ;;  %v276_v12 = vld [vmem:[%s1586_s1 + $0x18] sm:$0xff] (!%p223_p2)  ;;  %v1320_v27 = vshrl.u32 (!%p223_p2), %v329_v25, 7  ;;  %s1184_s14 = smov (!%p223_p2), 1   ;;  %s1078_s27 = sshll.u32 (!%p223_p2), %s1228_s22, 3 }
   0x8   : > { %v1267_v11 = vld [vmem:[%s1587_s2 + $0x20] sm:$0xff] (!%p223_p2)  ;;  %v1277_v13 = vld [vmem:[%s1587_s2 + $0x10] sm:$0xff] (!%p223_p2)  ;;  %v1283_v14 = vld [vmem:[%s1587_s2 + $0x38] sm:$0xff] (!%p223_p2)  ;;  %p261_p4 = scmp.lt.s32.totalorder (!%p223_p2), %s1078_s27, 15 }
   0x9   : > { %v1292_v15 = vld [vmem:[%s1587_s2 + $0x8] sm:$0xff] (!%p223_p2)  ;;  %v1306_v17 = vld [vmem:[%s1587_s2 + $0x30] sm:$0xff] (!%p223_p2)  ;;  %v1312_v18 = vld [vmem:[%s1587_s2 + $0x18] sm:$0xff] (!%p223_p2)  ;;  %v375_v30 = vsub.s32 (!%p223_p2), 1, %v1320_v27  ;;  %v331_v31 = vsub.s32 (!%p223_p2), 0, %v1320_v27  ;;  %v427_v35 = vsub.s32 (!%p223_p2), 2, %v1320_v27 }
   0xa   : > { %v1298_v16 = vld [vmem:[%s1587_s2 + $0x28] sm:$0xff] (!%p223_p2) }
   0xb   : > { %398 = vperm.xlu0 (!%p223_p2), %1131, %v274_v3   ;;  %358 = vperm.xlu1 (!%p223_p2), %1130, %v277_v4  }
   0xd   : > { %s257_s9 = scalar_select %p256_p3, %s1228_s22, 1 }
   0xe   : > { %s1593_s27 = smov (!%p261_p4, %s1078_s27), 15 }
   0xf   : > { %418 = vperm.xlu0 %1131, %v279_v5   ;;  %1132 = vset.pattern.permute.xlu1 %v1181_v1  ;;  %s1077_s10 = sshll.u32 %s257_s9, 2  ;;  %s1079_s28 = sshll.u32 %s1593_s27, 3 }
  0x10   : > { %410 = vperm.xlu1 %1132, %v277_v4   ;;  %s259_s13 = scalar_lea.vmem %s1585_s0, %s1077_s10  ;;  %s1555_s9 = scalar_lea.vmem %s1590_s5, %s1079_s28 }
  0x11   : > { %v272_v32 = vld [vmem:[%s259_s13] sm:$0x7]  ;;  %s1565_s11 = scalar_lea.vmem %s1591_s6, %s1079_s28 }
  0x12   : > { %v1331_v34 = vrot.slane %v272_v32, %v375_v30  ;;  %v1336_v36 = vrot.slane %v272_v32, %v331_v31  ;;  %v1340_v41 = vrot.slane %v272_v32, %v427_v35 }
  0x13   : > { %1139 = vset.pattern.permute.xlu0 %v1182_v2 }
  0x14   : > { %350 = vperm.xlu0 %1139, %v275_v6   ;;  %1133 = vset.pattern.permute.xlu1 %v1183_v7 }
  0x15   : > { %296 = vperm.xlu1 %1133, %v274_v3  }
  0x18   : > { %370 = vperm.xlu0 %1139, %v280_v8  }
  0x19   : > { %1134 = vset.pattern.permute.xlu1 %v1182_v2 }
  0x1a   : > { %346 = vperm.xlu1 %1134, %v274_v3  }
  0x1c   : > { %1142 = vset.pattern.permute.xlu0 %v1183_v7 }
  0x1d   : > { %291 = vperm.xlu0 %1142, %v273_v0  }
  0x1e   : > { %362 = vperm.xlu1 %1134, %v278_v9  }
  0x21   : > { %311 = vperm.xlu0 %1142, %v277_v4  }
  0x22   : > { %1135 = vset.pattern.permute.xlu1 %v1181_v1 }
  0x23   : > { %414 = vperm.xlu1 %1135, %v278_v9  }
  0x25   : > { %316 = vperm.xlu0 %1142, %v278_v9  }
  0x27   : > { %1136 = vset.pattern.permute.xlu1 %v1183_v7 }
  0x28   : > { %447 = vperm.xlu1 %1136, %v1262_v10  }
  0x29   : > { %467 = vperm.xlu0 %1142, %v1267_v11  }
  0x2c   : > { %301 = vperm.xlu1 %1136, %v275_v6  }
  0x2d   : > { %306 = vperm.xlu0 %1142, %v276_v12  }
  0x30   : > { %321 = vperm.xlu1 %1136, %v279_v5  }
  0x31   : > { %457 = vperm.xlu0 %1142, %v1277_v13  }
  0x34   : > { %1137 = vset.pattern.permute.xlu1 %v1182_v2 }
  0x35   : > { %366 = vperm.xlu1 %1137, %v279_v5   ;;  %482 = vperm.xlu0 %1142, %v1283_v14  }
  0x39   : > { %1138 = vset.pattern.permute.xlu1 %v1181_v1  ;;  %1146 = vset.pattern.permute.xlu0 %v1182_v2 }
  0x3a   : > { %402 = vperm.xlu1 %1138, %v275_v6  }
  0x3e   : > { %1140 = vset.pattern.permute.xlu1 %v1183_v7 }
  0x3f   : > { %452 = vperm.xlu1 %1140, %v1292_v15  }
  0x43   : > { %472 = vperm.xlu1 %1140, %v1298_v16  }
  0x47   : > { %326 = vperm.xlu1 %1140, %v280_v8  }
  0x4b   : > { %1141 = vset.pattern.permute.xlu1 %v1182_v2 }
  0x4c   : > { %354 = vperm.xlu1 %1141, %v276_v12  }
  0x50   : > { %1143 = vset.pattern.permute.xlu1 %v1181_v1 }
  0x51   : > { %406 = vperm.xlu1 %1143, %v276_v12  }
  0x55   : > { %422 = vperm.xlu1 %1143, %v280_v8  }
  0x59   : > { %1144 = vset.pattern.permute.xlu1 %v1183_v7 }
  0x5a   : > { %477 = vperm.xlu1 %1144, %v1306_v17  }
  0x5e   : > { %462 = vperm.xlu1 %1144, %v1312_v18  }
  0x62   : > { %1145 = vset.pattern.permute.xlu1 %v1182_v2 }
  0x86   : > { %v343_v19 = vpop.permute.xlu1 %342  ;;  %v395_v20 = vpop.permute.xlu0 %394 }
  0x87   : > { %v377_v40 = vmul.f32 %v1331_v34, %v343_v19  ;;  %v429_v45 = vmul.f32 %v1340_v41, %v395_v20 }
  0x8a   : > { %v359_v21 = vpop.permute.xlu1 %358  ;;  %v399_v22 = vpop.permute.xlu0 %398 }
  0x8b   : > { %v381_v43 = vmul.f32 %v1331_v34, %v359_v21  ;;  %v430_v5 = vmul.f32 %v1340_v41, %v399_v22 }
  0x8e   : > { %v1317_v23 = vpop.permute.xlu0 %418 }
  0x8f   : > { %v411_v24 = vpop.permute.xlu1 %410 }
  0x90   : > { %v433_v50 = vmul.f32 %v1340_v41, %v411_v24 }
  0x93   : > { %v351_v26 = vpop.permute.xlu0 %350 }
  0x94   : > { %v297_v28 = vpop.permute.xlu1 %296  ;;  %v379_v63 = vmul.f32 %v1331_v34, %v351_v26 }
  0x95   : > { %v334_v0 = vmul.f32 %v1336_v36, %v297_v28 }
  0x97   : > { %v1325_v29 = vpop.permute.xlu0 %370 }
  0x99   : > { %v347_v33 = vpop.permute.xlu1 %346 }
  0x9a   : > { %v378_v62 = vmul.f32 %v1331_v34, %v347_v33 }
  0x9c   : > { %v292_v37 = vpop.permute.xlu0 %291  ;;  %v386_v6 = vadd.f32 %v378_v62, %v334_v0 }
  0x9d   : > { %v363_v38 = vpop.permute.xlu1 %362  ;;  %v333_v39 = vmul.f32 %v1336_v36, %v292_v37 }
  0x9e   : > { %v382_v12 = vmul.f32 %v1331_v34, %v363_v38  ;;  %v438_v24 = vadd.f32 %v430_v5, %v386_v6 }
  0x9f   : > { %v385_v46 = vadd.f32 %v377_v40, %v333_v39 }
  0xa0   : > { %v312_v42 = vpop.permute.xlu0 %311 }
  0xa1   : > { %v337_v44 = vmul.f32 %v1336_v36, %v312_v42  ;;  %v437_v51 = vadd.f32 %v429_v45, %v385_v46 }
  0xa2   : > { %v415_v47 = vpop.permute.xlu1 %414 }
  0xa3   : > { %v389_v48 = vadd.f32 %v381_v43, %v337_v44  ;;  %v434_v28 = vmul.f32 %v1340_v41, %v415_v47 }
  0xa4   : > { %v317_v49 = vpop.permute.xlu0 %316 }
  0xa5   : > { %v441_v53 = vadd.f32 %v433_v50, %v389_v48  ;;  %v338_v7 = vmul.f32 %v1336_v36, %v317_v49  ;;  %v384_v48 = vmul.f32 %v1331_v34, %v1325_v29 }
  0xa7   : > { %v448_v52 = vpop.permute.xlu1 %447  ;;  %v390_v20 = vadd.f32 %v382_v12, %v338_v7 }
  0xa8   : > { %v1346_v54 = vadd.f32 %v448_v52, %v437_v51  ;;  %v468_v55 = vpop.permute.xlu0 %467  ;;  %v435_v52 = vmul.f32 %v1340_v41, %v1317_v23 }
  0xa9   : > { %v1348_v56 = vadd.f32 %v468_v55, %v441_v53  ;;  %v442_v22 = vadd.f32 %v434_v28, %v390_v20 }
  0xaa   : > { %v494_v57 = vsel %vm493_vm0, %v1346_v54, 0.0 }
  0xab   : > { %v302_v58 = vpop.permute.xlu1 %301  ;;  %495 = vadd.xlane.f32.xlu1 %v494_v57  ;;  %v506_v59 = vsel %vm493_vm0, %v1348_v56, 0.0  ;;  %v531_v6 = vmul.f32 %v1348_v56, %v1348_v56 }
  0xac   : > { %507 = vadd.xlane.f32.xlu0 %v506_v59  ;;  %v335_v3 = vmul.f32 %v1336_v36, %v302_v58  ;;  %v307_v4 = vpop.permute.xlu0 %306 }
  0xad   : > { %v336_v57 = vmul.f32 %v1336_v36, %v307_v4  ;;  %v527_v4 = vmul.f32 %v1346_v54, %v1346_v54 }
  0xae   : > { %v387_v19 = vadd.f32 %v379_v63, %v335_v3 }
  0xaf   : > { %v322_v60 = vpop.permute.xlu1 %321  ;;  %v535_v7 = vsel %vm493_vm0, %v527_v4, 0.0 }
  0xb0   : > { %v458_v25 = vpop.permute.xlu0 %457  ;;  %v339_v46 = vmul.f32 %v1336_v36, %v322_v60 }
  0xb4   : > { %v367_v61 = vpop.permute.xlu1 %366  ;;  %v483_v29 = vpop.permute.xlu0 %482 }
  0xb5   : > { %v383_v44 = vmul.f32 %v1331_v34, %v367_v61 }
  0xb7   : > { %v391_v49 = vadd.f32 %v383_v44, %v339_v46 }
  0xb9   : > { %v403_v8 = vpop.permute.xlu1 %402  ;;  %v443_v60 = vadd.f32 %v435_v52, %v391_v49 }
  0xba   : > { %v431_v9 = vmul.f32 %v1340_v41, %v403_v8  ;;  %v547_v8 = vsel %vm493_vm0, %v531_v6, 0.0 }
  0xbc   : > { %v439_v21 = vadd.f32 %v431_v9, %v387_v19 }
  0xbe   : > { %v453_v26 = vpop.permute.xlu1 %452  ;;  %v1365_v33 = vadd.f32 %v458_v25, %v439_v21 }
  0xbf   : > { %v1363_v32 = vadd.f32 %v453_v26, %v438_v24 }
  0xc0   : > { %v500_v38 = vsel %vm493_vm0, %v1365_v33, 0.0  ;;  %v529_v21 = vmul.f32 %v1365_v33, %v1365_v33 }
  0xc1   : > { %v497_v35 = vsel %vm493_vm0, %v1363_v32, 0.0  ;;  %v528_v9 = vmul.f32 %v1363_v32, %v1363_v32 }
  0xc2   : > { %v473_v37 = vpop.permute.xlu1 %472  ;;  %498 = vadd.xlane.f32.xlu0 %v497_v35  ;;  %v541_v25 = vsel %vm493_vm0, %v529_v21, 0.0 }
  0xc3   : > { %v1369_v39 = vadd.f32 %v473_v37, %v442_v22  ;;  %v538_v19 = vsel %vm493_vm0, %v528_v9, 0.0 }
  0xc5   : > { %v509_v40 = vsel %vm493_vm0, %v1369_v39, 0.0  ;;  %v532_v12 = vmul.f32 %v1369_v39, %v1369_v39 }
  0xc6   : > { %v327_v42 = vpop.permute.xlu1 %326  ;;  %501 = vadd.xlane.f32.xlu0 %v500_v38  ;;  %510 = vadd.xlane.f32.xlu1 %v509_v40 }
  0xc7   : > { %v340_v47 = vmul.f32 %v1336_v36, %v327_v42  ;;  %v550_v20 = vsel %vm493_vm0, %v532_v12, 0.0 }
  0xc9   : > { %v392_v53 = vadd.f32 %v384_v48, %v340_v47 }
  0xcb   : > { %v355_v43 = vpop.permute.xlu1 %354 }
  0xcc   : > { %v380_v55 = vmul.f32 %v1331_v34, %v355_v43 }
  0xce   : > { %v388_v62 = vadd.f32 %v380_v55, %v336_v57 }
  0xd0   : > { %v407_v45 = vpop.permute.xlu1 %406 }
  0xd1   : > { %v432_v58 = vmul.f32 %v1340_v41, %v407_v45 }
  0xd3   : > { %v440_v3 = vadd.f32 %v432_v58, %v388_v62 }
  0xd4   : > { %v423_v50 = vpop.permute.xlu1 %422 }
  0xd5   : > { %v436_v51 = vmul.f32 %v1340_v41, %v423_v50 }
  0xd7   : > { %v444_v59 = vadd.f32 %v436_v51, %v392_v53 }
  0xd9   : > { %v478_v61 = vpop.permute.xlu1 %477  ;;  %v1388_v0 = vadd.f32 %v483_v29, %v444_v59 }
  0xda   : > { %v1386_v63 = vadd.f32 %v478_v61, %v443_v60 }
  0xdb   : > { %v515_v41 = vsel %vm493_vm0, %v1388_v0, 0.0  ;;  %v534_v22 = vmul.f32 %v1388_v0, %v1388_v0 }
  0xdc   : > { %v512_v23 = vsel %vm493_vm0, %v1386_v63, 0.0  ;;  %v533_v24 = vmul.f32 %v1386_v63, %v1386_v63 }
  0xdd   : > { %v463_v5 = vpop.permute.xlu1 %462  ;;  %513 = vadd.xlane.f32.xlu1 %v512_v23  ;;  %v556_v37 = vsel %vm493_vm0, %v534_v22, 0.0 }
  0xde   : > { %v1392_v34 = vadd.f32 %v463_v5, %v440_v3  ;;  %v553_v26 = vsel %vm493_vm0, %v533_v24, 0.0 }
  0xe0   : > { %v503_v36 = vsel %vm493_vm0, %v1392_v34, 0.0  ;;  %v530_v28 = vmul.f32 %v1392_v34, %v1392_v34 }
  0xe1   : > { %504 = vadd.xlane.f32.xlu0 %v503_v36  ;;  %516 = vadd.xlane.f32.xlu1 %v515_v41 }
  0xe2   : > { %v544_v35 = vsel %vm493_vm0, %v530_v28, 0.0 }
  0xe5   : > { %536 = vadd.xlane.f32.xlu0 %v535_v7  ;;  %548 = vadd.xlane.f32.xlu1 %v547_v8 }
  0xe9   : > { %539 = vadd.xlane.f32.xlu0 %v538_v19  ;;  %551 = vadd.xlane.f32.xlu1 %v550_v20 }
  0xed   : > { %542 = vadd.xlane.f32.xlu0 %v541_v25  ;;  %554 = vadd.xlane.f32.xlu1 %v553_v26 }
  0xf1   : > { %545 = vadd.xlane.f32.xlu0 %v544_v35  ;;  %557 = vadd.xlane.f32.xlu1 %v556_v37 }
 0x138   : > { %v496_v40 = vpop.xlane.xlu1 %495 }
 0x139   : > { %v508_v38 = vpop.xlane.xlu0 %507  ;;  %v519_v48 = vmul.f32 0.015625, %v496_v40 }
 0x13a   : > { %v523_v49 = vmul.f32 0.015625, %v508_v38 }
 0x13b   : > { %v567_v55 = vmul.f32 %v519_v48, %v519_v48 }
 0x13c   : > { %v571_v57 = vmul.f32 %v523_v49, %v523_v49 }
 0x14f   : > { %v499_v42 = vpop.xlane.xlu0 %498 }
 0x150   : > { %v1422_v50 = vmul.f32 0.015625, %v499_v42 }
 0x152   : > { %v568_v29 = vmul.f32 %v1422_v50, %v1422_v50 }
 0x153   : > { %v511_v43 = vpop.xlane.xlu1 %510  ;;  %v502_v44 = vpop.xlane.xlu0 %501 }
 0x154   : > { %v1424_v51 = vmul.f32 0.015625, %v511_v43  ;;  %v1426_v60 = vmul.f32 0.015625, %v502_v44 }
 0x156   : > { %v572_v3 = vmul.f32 %v1424_v51, %v1424_v51  ;;  %v569_v8 = vmul.f32 %v1426_v60, %v1426_v60 }
 0x16a   : > { %v514_v45 = vpop.xlane.xlu1 %513 }
 0x16b   : > { %v1432_v23 = vmul.f32 0.015625, %v514_v45 }
 0x16d   : > { %v573_v19 = vmul.f32 %v1432_v23, %v1432_v23 }
 0x16e   : > { %v505_v46 = vpop.xlane.xlu0 %504  ;;  %v517_v47 = vpop.xlane.xlu1 %516 }
 0x16f   : > { %v522_v20 = vmul.f32 0.015625, %v505_v46  ;;  %v526_v21 = vmul.f32 0.015625, %v517_v47 }
 0x171   : > { %v570_v40 = vmul.f32 %v522_v20, %v522_v20  ;;  %v574_v42 = vmul.f32 %v526_v21, %v526_v21 }
 0x172   : > { %v537_v52 = vpop.xlane.xlu0 %536  ;;  %v549_v53 = vpop.xlane.xlu1 %548 }
 0x173   : > { %v559_v58 = vmul.f32 0.015625, %v537_v52  ;;  %v563_v59 = vmul.f32 0.015625, %v549_v53 }
 0x175   : > { %v575_v61 = vsub.f32 %v559_v58, %v567_v55  ;;  %v579_v62 = vsub.f32 %v563_v59, %v571_v57 }
 0x176   : > { %v540_v5 = vpop.xlane.xlu0 %539  ;;  %v552_v36 = vpop.xlane.xlu1 %551 }
 0x177   : > { %v583_v41 = vadd.f32 1e-05, %v575_v61  ;;  %v587_v4 = vadd.f32 1e-05, %v579_v62  ;;  %v560_v6 = vmul.f32 0.015625, %v540_v5  ;;  %v564_v7 = vmul.f32 0.015625, %v552_v36 }
 0x179   : > { %1157 = vrsqrt.f32 %v583_v41  ;;  %v576_v9 = vsub.f32 %v560_v6, %v568_v29  ;;  %v580_v12 = vsub.f32 %v564_v7, %v572_v3 }
 0x17a   : > { %1159 = vrsqrt.f32 %v587_v4  ;;  %v543_v24 = vpop.xlane.xlu0 %542  ;;  %v555_v25 = vpop.xlane.xlu1 %554 }
 0x17b   : > { %v584_v26 = vadd.f32 1e-05, %v576_v9  ;;  %v588_v28 = vadd.f32 1e-05, %v580_v12  ;;  %v561_v22 = vmul.f32 0.015625, %v543_v24  ;;  %v565_v35 = vmul.f32 0.015625, %v555_v25 }
 0x17d   : > { %1161 = vrsqrt.f32 %v584_v26  ;;  %v577_v37 = vsub.f32 %v561_v22, %v569_v8  ;;  %v581_v38 = vsub.f32 %v565_v35, %v573_v19  ;;  %v1185_v35 = vmov 3  }
 0x17e   : > { %1163 = vrsqrt.f32 %v588_v28  ;;  %v546_v43 = vpop.xlane.xlu0 %545  ;;  %v558_v44 = vpop.xlane.xlu1 %557 }
 0x17f   : > { %v585_v45 = vadd.f32 1e-05, %v577_v37  ;;  %v589_v52 = vadd.f32 1e-05, %v581_v38  ;;  %v562_v53 = vmul.f32 0.015625, %v546_v43  ;;  %v566_v46 = vmul.f32 0.015625, %v558_v44 }
 0x180   : > { %v809_v37 = vld [vmem:[%s1588_s3 + $0x10] sm:$0xff]  ;;  %v814_v38 = vld [vmem:[%s1588_s3 + $0x38] sm:$0xff]  ;;  %v811_v43 = vld [vmem:[%s1588_s3 + $0x20] sm:$0xff] }
 0x181   : > { %1165 = vrsqrt.f32 %v585_v45  ;;  %v578_v47 = vsub.f32 %v562_v53, %v570_v40  ;;  %v582_v55 = vsub.f32 %v566_v46, %v574_v42  ;;  %v813_v44 = vld [vmem:[%s1588_s3 + $0x30] sm:$0xff]  ;;  %v818_v53 = vld [vmem:[%s1588_s3 + $0x58] sm:$0xff] }
 0x182   : > { %1167 = vrsqrt.f32 %v589_v52  ;;  %v1098_v45 = vpack.c.bf16 %v813_v44, %v811_v43  ;;  %v816_v52 = vld [vmem:[%s1588_s3 + $0x48] sm:$0xff] }
 0x183   : > { %v1158_v57 = vpop.eup %1157  ;;  %v586_v58 = vadd.f32 1e-05, %v578_v47  ;;  %v590_v59 = vadd.f32 1e-05, %v582_v55  ;;  %v1100_v46 = vpack.c.bf16 %v818_v53, %v816_v52  ;;  %v815_v47 = vld [vmem:[%s1588_s3 + $0x40] sm:$0xff]  ;;  %v817_v55 = vld [vmem:[%s1588_s3 + $0x50] sm:$0xff] }
 0x184   : > { %v1160_v61 = vpop.eup %1159  ;;  %v599_v62 = vmul.f32 %v1158_v57, %v1262_v10  ;;  %v1102_v57 = vpack.c.bf16 %v817_v55, %v815_v47 }
 0x185   : > { %1169 = vrsqrt.f32 %v586_v58  ;;  %v603_v29 = vmul.f32 %v1160_v61, %v1267_v11 }
 0x186   : > { %1171 = vrsqrt.f32 %v590_v59  ;;  %v607_v3 = vmul.f32 %v599_v62, %v519_v48 }
 0x187   : > { %v1162_v5 = vpop.eup %1161  ;;  %v611_v36 = vmul.f32 %v603_v29, %v523_v49 }
 0x188   : > { %v1164_v41 = vpop.eup %1163  ;;  %623 = vrot.lane.b32.xlu0 %v607_v3, %s1184_s14  ;;  %v600_v4 = vmul.f32 %v1162_v5, %v1292_v15  ;;  %v821_v5 = vld [vmem:[%s1588_s3 + $0x70] sm:$0xff] }
 0x189   : > { %631 = vrot.lane.b32.xlu1 %v611_v36, %s1184_s14  ;;  %v604_v6 = vmul.f32 %v1164_v41, %v1298_v16 }
 0x18a   : > { %v608_v7 = vmul.f32 %v600_v4, %v1422_v50 }
 0x18b   : > { %v1166_v8 = vpop.eup %1165  ;;  %v612_v9 = vmul.f32 %v604_v6, %v1424_v51 }
 0x18c   : > { %v1168_v12 = vpop.eup %1167  ;;  %v601_v19 = vmul.f32 %v1166_v8, %v1277_v13 }
 0x18d   : > { %625 = vrot.lane.b32.xlu1 %v608_v7, %s1184_s14  ;;  %633 = vrot.lane.b32.xlu0 %v612_v9, %s1184_s14  ;;  %v605_v48 = vmul.f32 %v1168_v12, %v1306_v17  ;;  %v1186_v7 = vmov 0.0  }
 0x18e   : > { %v609_v49 = vmul.f32 %v601_v19, %v1426_v60  ;;  %v808_v60 = vld [vmem:[%s1588_s3 + $0x8] sm:$0xff]  ;;  %923 = vmatprep.mubr.f32.mxu0 %v1186_v7  ;;  %947 = vmatprep.mubr.f32.mxu1 %v1186_v7 }
 0x18f   : > { %v1170_v24 = vpop.eup %1169  ;;  %v613_v25 = vmul.f32 %v605_v48, %v1432_v23  ;;  %v810_v23 = vld [vmem:[%s1588_s3 + $0x18] sm:$0xff] }
 0x190   : > { %v1172_v26 = vpop.eup %1171  ;;  %v602_v28 = vmul.f32 %v1170_v24, %v1312_v18 }
 0x191   : > { %627 = vrot.lane.b32.xlu1 %v609_v49, %s1184_s14  ;;  %635 = vrot.lane.b32.xlu0 %v613_v25, %s1184_s14  ;;  %v606_v50 = vmul.f32 %v1172_v26, %v1283_v14 }
 0x192   : > { %v610_v51 = vmul.f32 %v602_v28, %v522_v20  ;;  %v807_v20 = vld [vmem:[%s1588_s3] sm:$0xff] }
 0x193   : > { %v614_v22 = vmul.f32 %v606_v50, %v526_v21  ;;  %v1092_v21 = vpack.c.bf16 %v810_v23, %v808_v60  ;;  %v1094_v40 = vpack.c.bf16 %v809_v37, %v807_v20 }
 0x195   : > { %629 = vrot.lane.b32.xlu1 %v610_v51, %s1184_s14  ;;  %637 = vrot.lane.b32.xlu0 %v614_v22, %s1184_s14 }
 0x196   : > { %1093 = vmatprep.subr.bf16.mxu0 %v1092_v21  ;;  %1108 = vmatprep.subr.bf16.mxu1 %v1092_v21 }
 0x197   : > { %1095 = vmatpush1.bf16.msra.mxu0 %v1094_v40  ;;  %1112 = vmatpush1.bf16.msra.mxu1 %v1094_v40 }
 0x199   : > { %657 = vperm.xlu1 %1145, %v599_v62   ;;  %677 = vperm.xlu0 %1146, %v603_v29   ;;  %v820_v62 = vld [vmem:[%s1588_s3 + $0x68] sm:$0xff]  ;;  %v822_v29 = vld [vmem:[%s1588_s3 + $0x78] sm:$0xff] }
 0x19a   : > { %v1104_v3 = vpack.c.bf16 %v822_v29, %v820_v62 }
 0x19d   : > { %682 = vperm.xlu1 %1145, %v604_v6   ;;  %662 = vperm.xlu0 %1146, %v600_v4  }
 0x1a1   : > { %1148 = vset.pattern.permute.xlu1 %v1185_v35  ;;  %1147 = vset.pattern.permute.xlu0 %v1185_v35 }
 0x1a2   : > { %776 = vperm.xlu1 %1148, %v1267_v11   ;;  %760 = vperm.xlu0 %1147, %v1262_v10  }
 0x1a6   : > { %1149 = vset.pattern.permute.xlu1 %v1182_v2  ;;  %764 = vperm.xlu0 %1147, %v1292_v15  }
 0x1a7   : > { %667 = vperm.xlu1 %1149, %v601_v19  }
 0x1aa   : > { %768 = vperm.xlu0 %1147, %v1277_v13  }
 0x1ab   : > { %687 = vperm.xlu1 %1149, %v605_v48  }
 0x1ae   : > { %1154 = vset.pattern.permute.xlu0 %v1181_v1 }
 0x1af   : > { %1150 = vset.pattern.permute.xlu1 %v1185_v35 }
 0x1b0   : > { %780 = vperm.xlu1 %1150, %v1298_v16  }
 0x1b4   : > { %1151 = vset.pattern.permute.xlu1 %v1182_v2  ;;  %v812_v2 = vld [vmem:[%s1588_s3 + $0x28] sm:$0xff] }
 0x1b5   : > { %672 = vperm.xlu1 %1151, %v602_v28   ;;  %v1096_v42 = vpack.c.bf16 %v814_v38, %v812_v2 }
 0x1b7   : > { %1097 = vmatprep.subr.bf16.mxu0 %v1096_v42  ;;  %1109 = vmatprep.subr.bf16.mxu1 %v1096_v42 }
 0x1b8   : > { %1099 = vmatpush1.bf16.msra.mxu0 %v1098_v45  ;;  %1113 = vmatpush1.bf16.msra.mxu1 %v1098_v45 }
 0x1b9   : > { %692 = vperm.xlu1 %1151, %v606_v50   ;;  %1101 = vmatprep.subr.bf16.mxu0 %v1100_v46 }
 0x1ba   : > { %1110 = vmatprep.subr.bf16.mxu1 %v1100_v46 }
 0x1bc   : > { %1103 = vmatpush1.bf16.msra.mxu0 %v1102_v57  ;;  %1114 = vmatpush1.bf16.msra.mxu1 %v1102_v57 }
 0x1bd   : > { %1152 = vset.pattern.permute.xlu1 %v1185_v35  ;;  %1105 = vmatprep.subr.bf16.mxu0 %v1104_v3 }
 0x1be   : > { %784 = vperm.xlu1 %1152, %v1306_v17   ;;  %1111 = vmatprep.subr.bf16.mxu1 %v1104_v3 }
 0x1c2   : > { %1153 = vset.pattern.permute.xlu1 %v1181_v1  ;;  %v819_v1 = vld [vmem:[%s1588_s3 + $0x60] sm:$0xff] }
 0x1fa   : > { %v624_v58 = vpop.permute.xlu0 %623 }
 0x1fb   : > { %v647_v59 = vsub.f32 %v1262_v10, %v624_v58  ;;  %v632_v61 = vpop.permute.xlu1 %631  ;;  %v1106_v10 = vpack.c.bf16 %v821_v5, %v819_v1 }
 0x1fc   : > { %v651_v36 = vsub.f32 %v1267_v11, %v632_v61 }
 0x1fd   : > { %705 = vperm.xlu1 %1153, %v647_v59   ;;  %1107 = vmatpush1.bf16.msra.mxu0 %v1106_v10 }
 0x1fe   : > { %1115 = vmatpush1.bf16.msra.mxu1 %v1106_v10 }
 0x1ff   : > { %v634_v41 = vpop.permute.xlu0 %633  ;;  %v626_v4 = vpop.permute.xlu1 %625 }
 0x200   : > { %v652_v6 = vsub.f32 %v1298_v16, %v634_v41  ;;  %v648_v8 = vsub.f32 %v1292_v15, %v626_v4 }
 0x201   : > { %725 = vperm.xlu1 %1153, %v651_v36  }
 0x202   : > { %730 = vperm.xlu0 %1154, %v652_v6  }
 0x203   : > { %v636_v9 = vpop.permute.xlu0 %635  ;;  %v628_v12 = vpop.permute.xlu1 %627 }
 0x204   : > { %v653_v11 = vsub.f32 %v1306_v17, %v636_v9  ;;  %v649_v19 = vsub.f32 %v1277_v13, %v628_v12 }
 0x205   : > { %710 = vperm.xlu1 %1153, %v648_v8  }
 0x206   : > { %735 = vperm.xlu0 %1154, %v653_v11  }
 0x207   : > { %v638_v16 = vpop.permute.xlu0 %637  ;;  %v630_v49 = vpop.permute.xlu1 %629 }
 0x208   : > { %v654_v48 = vsub.f32 %v1283_v14, %v638_v16  ;;  %v650_v24 = vsub.f32 %v1312_v18, %v630_v49 }
 0x209   : > { %715 = vperm.xlu1 %1153, %v649_v19  }
 0x20a   : > { %740 = vperm.xlu0 %1154, %v654_v48  }
 0x20d   : > { %720 = vperm.xlu1 %1153, %v650_v24   ;;  %v972_v24 = vld [vmem:[%s1555_s9] sm:$0xff] }
 0x20e   : > { %1156 = vset.pattern.permute.xlu0 %v1185_v35 }
 0x211   : > { %1155 = vset.pattern.permute.xlu1 %v1185_v35 }
 0x212   : > { %772 = vperm.xlu1 %1155, %v1312_v18  }
 0x216   : > { %788 = vperm.xlu1 %1155, %v1283_v14  }
 0x218   : > { %v658_v15 = vpop.permute.xlu1 %657  ;;  %v678_v28 = vpop.permute.xlu0 %677 }
 0x219   : > { %v695_v37 = vmul.f32 %v658_v15, %v1346_v54  ;;  %v699_v14 = vmul.f32 %v678_v28, %v1348_v56  ;;  %v976_v28 = vld [vmem:[%s1555_s9 + $0x20] sm:$0xff] }
 0x21c   : > { %v683_v17 = vpop.permute.xlu1 %682  ;;  %v663_v51 = vpop.permute.xlu0 %662 }
 0x21d   : > { %v700_v40 = vmul.f32 %v683_v17, %v1369_v39  ;;  %v696_v53 = vmul.f32 %v663_v51, %v1363_v32 }
 0x221   : > { %v777_v13 = vpop.permute.xlu1 %776  ;;  %v761_v60 = vpop.permute.xlu0 %760 }
 0x225   : > { %v765_v20 = vpop.permute.xlu0 %764 }
 0x226   : > { %v668_v25 = vpop.permute.xlu1 %667 }
 0x227   : > { %v697_v59 = vmul.f32 %v668_v25, %v1365_v33 }
 0x229   : > { %v769_v35 = vpop.permute.xlu0 %768 }
 0x22a   : > { %v688_v26 = vpop.permute.xlu1 %687 }
 0x22b   : > { %v701_v46 = vmul.f32 %v688_v26, %v1386_v63 }
 0x22f   : > { %v781_v50 = vpop.permute.xlu1 %780 }
 0x234   : > { %v673_v22 = vpop.permute.xlu1 %672 }
 0x235   : > { %v698_v5 = vmul.f32 %v673_v22, %v1392_v34 }
 0x238   : > { %v693_v23 = vpop.permute.xlu1 %692 }
 0x239   : > { %v702_v6 = vmul.f32 %v693_v23, %v1388_v0  ;;  %v823_v0 = vld [vmem:[%s1589_s4] sm:$0x3] }
 0x23a   : > { %v832_v48 = vrot.slane %v823_v0, %v375_v30 }
 0x23d   : > { %v785_v21 = vpop.permute.xlu1 %784 }
 0x27c   : > { %v706_v2 = vpop.permute.xlu1 %705 }
 0x27d   : > { %v743_v18 = vadd.f32 %v706_v2, %v695_v37 }
 0x27f   : > { %vm751_vm1 = vcmp.ge.f32.partialorder %v743_v18, 0.0  ;;  %v791_v38 = vmul.f32 %v761_v60, %v743_v18  ;;  %v973_v60 = vld [vmem:[%s1555_s9 + $0x8] sm:$0xff] }
 0x280   : > { %v726_v42 = vpop.permute.xlu1 %725 }
 0x281   : > { %v731_v43 = vpop.permute.xlu0 %730  ;;  %v747_v44 = vadd.f32 %v726_v42, %v699_v14  ;;  %v799_v45 = vsel %vm751_vm1, %v743_v18, %v791_v38 }
 0x282   : > { %v748_v52 = vadd.f32 %v731_v43, %v700_v40  ;;  %1082 = vmatmul.mubr.msk.f32.vlgmr.msra.gmra.mrb[0].mxu0 %vm493_vm0, %v799_v45 }
 0x283   : > { %vm755_vm2 = vcmp.ge.f32.partialorder %v747_v44, 0.0  ;;  %v795_v54 = vmul.f32 %v777_v13, %v747_v44  ;;  %929 = vmatprep.mubr.f32.mxu0 %v1186_v7 }
 0x284   : > { %v711_v56 = vpop.permute.xlu1 %710  ;;  %v796_v47 = vmul.f32 %v781_v50, %v748_v52  ;;  %vm756_vm3 = vcmp.ge.f32.partialorder %v748_v52, 0.0 }
 0x285   : > { %v736_v55 = vpop.permute.xlu0 %735  ;;  %v744_v57 = vadd.f32 %v711_v56, %v696_v53  ;;  %v803_v39 = vsel %vm755_vm2, %v747_v44, %v795_v54  ;;  %v974_v44 = vld [vmem:[%s1555_s9 + $0x10] sm:$0xff] }
 0x286   : > { %v749_v58 = vadd.f32 %v736_v55, %v701_v46  ;;  %1086 = vmatmul.mubr.msk.f32.vlgmr.msra.gmra.mrb[0].mxu1 %vm493_vm0, %v803_v39  ;;  %v804_v63 = vsel %vm756_vm3, %v748_v52, %v796_v47  ;;  %v978_v52 = vld [vmem:[%s1555_s9 + $0x30] sm:$0xff] }
 0x287   : > { %vm752_vm4 = vcmp.ge.f32.partialorder %v744_v57, 0.0  ;;  %v792_v61 = vmul.f32 %v765_v20, %v744_v57  ;;  %953 = vmatprep.mubr.f32.mxu1 %v1186_v7  ;;  %v977_v20 = vld [vmem:[%s1555_s9 + $0x28] sm:$0xff] }
 0x288   : > { %v716_v32 = vpop.permute.xlu1 %715  ;;  %v797_v62 = vmul.f32 %v785_v21, %v749_v58  ;;  %vm757_vm5 = vcmp.ge.f32.partialorder %v749_v58, 0.0 }
 0x289   : > { %v745_v29 = vadd.f32 %v716_v32, %v697_v59  ;;  %v800_v3 = vsel %vm752_vm4, %v744_v57, %v792_v61  ;;  %v741_v4 = vpop.permute.xlu0 %740 }
 0x28a   : > { %1083 = vmatmul.mubr.msk.f32.gmra.mrb[2].mxu0 %vm493_vm0, %v800_v3  ;;  %1087 = vmatmul.mubr.msk.f32.gmra.mrb[2].mxu1 %vm493_vm0, %v804_v63  ;;  %v805_v36 = vsel %vm757_vm5, %v749_v58, %v797_v62  ;;  %v750_v12 = vadd.f32 %v741_v4, %v702_v6 }
 0x28b   : > { %vm753_vm6 = vcmp.ge.f32.partialorder %v745_v29, 0.0  ;;  %v793_v1 = vmul.f32 %v769_v35, %v745_v29  ;;  %935 = vmatprep.mubr.f32.mxu0 %v1186_v7  ;;  %959 = vmatprep.mubr.f32.mxu1 %v1186_v7 }
 0x28c   : > { %v721_v33 = vpop.permute.xlu1 %720  ;;  %vm758_vm8 = vcmp.ge.f32.partialorder %v750_v12, 0.0 }
 0x28d   : > { %v801_v10 = vsel %vm753_vm6, %v745_v29, %v793_v1  ;;  %v746_v41 = vadd.f32 %v721_v33, %v698_v5  ;;  %v975_v29 = vld [vmem:[%s1555_s9 + $0x18] sm:$0xff] }
 0x28e   : > { %1084 = vmatmul.mubr.msk.f32.gmra.mrb[4].mxu0 %vm493_vm0, %v801_v10  ;;  %1088 = vmatmul.mubr.msk.f32.gmra.mrb[4].mxu1 %vm493_vm0, %v805_v36  ;;  %v979_v10 = vld [vmem:[%s1555_s9 + $0x38] sm:$0xff] }
 0x28f   : > { %941 = vmatprep.mubr.f32.mxu0 %v1186_v7  ;;  %965 = vmatprep.mubr.f32.mxu1 %v1186_v7  ;;  %vm754_vm7 = vcmp.ge.f32.partialorder %v746_v41, 0.0  ;;  %v828_v7 = vrot.slane %v823_v0, %v331_v31 }
 0x291   : > { %v773_v8 = vpop.permute.xlu1 %772 }
 0x292   : > { %v794_v9 = vmul.f32 %v773_v8, %v746_v41 }
 0x294   : > { %v802_v34 = vsel %vm754_vm7, %v746_v41, %v794_v9 }
 0x295   : > { %1085 = vmatmul.mubr.msk.f32.gmra.mrb[6].mxu0 %vm493_vm0, %v802_v34  ;;  %v789_v11 = vpop.permute.xlu1 %788 }
 0x296   : > { %v798_v19 = vmul.f32 %v789_v11, %v750_v12 }
 0x298   : > { %v806_v16 = vsel %vm758_vm8, %v750_v12, %v798_v19 }
 0x299   : > { %1089 = vmatmul.mubr.msk.f32.gmra.mrb[6].mxu1 %vm493_vm0, %v806_v16 }
 0x355   : > { %v925_v49 = vpop.f32.mrb[0].mxu0 }
 0x356   : > { %v926_v15 = vadd.f32 %v925_v49, %v828_v7  ;;  %v927_v17 = vpop.f32.mrb[1].mxu0 }
 0x357   : > { %v928_v13 = vadd.f32 %v927_v17, %v832_v48 }
 0x358   : > { %v980_v25 = vmul.f32 %v972_v24, %v926_v15 }
 0x359   : > { %v949_v26 = vpop.f32.mrb[0].mxu1 }
 0x35a   : > { %v988_v31 = vadd.f32 %v980_v25, %v928_v13  ;;  %v950_v50 = vadd.f32 %v949_v26, %v828_v7  ;;  %v951_v27 = vpop.f32.mrb[1].mxu1 }
 0x35b   : > { %v952_v30 = vadd.f32 %v951_v27, %v832_v48 }
 0x35c   : > { %996 = vst [vmem:[%s1565_s11] sm:$0xff] %v988_v31  ;;  %v984_v51 = vmul.f32 %v976_v28, %v950_v50 }
 0x35d   : > { %v931_v22 = vpop.f32.mrb[2].mxu0  ;;  %v955_v23 = vpop.f32.mrb[2].mxu1 }
 0x35e   : > { %v992_v21 = vadd.f32 %v984_v51, %v952_v30  ;;  %v932_v37 = vadd.f32 %v931_v22, %v828_v7  ;;  %v956_v35 = vadd.f32 %v955_v23, %v828_v7  ;;  %v933_v2 = vpop.f32.mrb[3].mxu0  ;;  %v957_v18 = vpop.f32.mrb[3].mxu1 }
 0x35f   : > { %v934_v14 = vadd.f32 %v933_v2, %v832_v48  ;;  %v958_v38 = vadd.f32 %v957_v18, %v832_v48 }
 0x360   : > { %1000 = vst [vmem:[%s1565_s11 + $0x20] sm:$0xff] %v992_v21  ;;  %v981_v40 = vmul.f32 %v973_v60, %v932_v37  ;;  %v985_v42 = vmul.f32 %v977_v20, %v956_v35 }
 0x361   : > { %v937_v43 = vpop.f32.mrb[4].mxu0  ;;  %v961_v45 = vpop.f32.mrb[4].mxu1 }
 0x362   : > { %v989_v53 = vadd.f32 %v981_v40, %v934_v14  ;;  %v993_v54 = vadd.f32 %v985_v42, %v958_v38  ;;  %v938_v46 = vadd.f32 %v937_v43, %v828_v7  ;;  %v962_v56 = vadd.f32 %v961_v45, %v828_v7  ;;  %v939_v47 = vpop.f32.mrb[5].mxu0  ;;  %v963_v55 = vpop.f32.mrb[5].mxu1 }
 0x363   : > { %v940_v57 = vadd.f32 %v939_v47, %v832_v48  ;;  %v964_v39 = vadd.f32 %v963_v55, %v832_v48 }
 0x364   : > { %997 = vst [vmem:[%s1565_s11 + $0x8] sm:$0xff] %v989_v53  ;;  %1001 = vst [vmem:[%s1565_s11 + $0x28] sm:$0xff] %v993_v54  ;;  %v982_v58 = vmul.f32 %v974_v44, %v938_v46  ;;  %v986_v59 = vmul.f32 %v978_v52, %v962_v56 }
 0x366   : > { %v990_v61 = vadd.f32 %v982_v58, %v940_v57  ;;  %v994_v32 = vadd.f32 %v986_v59, %v964_v39 }
 0x368   : > { %998 = vst [vmem:[%s1565_s11 + $0x10] sm:$0xff] %v990_v61  ;;  %1002 = vst [vmem:[%s1565_s11 + $0x30] sm:$0xff] %v994_v32  ;;  %v943_v62 = vpop.f32.mrb[6].mxu0 }
 0x369   : > { %v944_v3 = vadd.f32 %v943_v62, %v828_v7  ;;  %v945_v63 = vpop.f32.mrb[7].mxu0 }
 0x36a   : > { %v946_v1 = vadd.f32 %v945_v63, %v832_v48 }
 0x36b   : > { %v983_v33 = vmul.f32 %v975_v29, %v944_v3 }
 0x36c   : > { %v967_v5 = vpop.f32.mrb[6].mxu1 }
 0x36d   : > { %v991_v36 = vadd.f32 %v983_v33, %v946_v1  ;;  %v968_v41 = vadd.f32 %v967_v5, %v828_v7  ;;  %v969_v4 = vpop.f32.mrb[7].mxu1 }
 0x36e   : > { %v970_v6 = vadd.f32 %v969_v4, %v832_v48 }
 0x36f   : > { %999 = vst [vmem:[%s1565_s11 + $0x18] sm:$0xff] %v991_v36  ;;  %v987_v8 = vmul.f32 %v979_v10, %v968_v41 }
 0x371   : > { %v995_v9 = vadd.f32 %v987_v8, %v970_v6 }
 0x373   : > { %1003 = vst [vmem:[%s1565_s11 + $0x38] sm:$0xff] %v995_v9 }
 0x374 PF: > { %s16_s21 = sadd.s32 1, %s1179_s21  }
 0x375   : > { %p13_p5 = scmp.ge.s32.totalorder %s16_s21, 4  }
 0x377   :  { %15 = sbr.rel (!%p13_p5) target bundleno = 1 (0x1), region = 77 }

</bundles_post_ra>
